<compile_context>
chip_gen: v5e
topology: v5e:2x2
jax: 0.10.0
libtpu: 0.0.40
codegen_flags: <defaults>
</compile_context>

<pallas_src>
import math
from functools import partial

import jax
import jax.numpy as jnp
from jax.experimental import pallas as pl
from jax.experimental.pallas import tpu as pltpu


def _round_up(x, m):
    return (x + m - 1) // m * m


def _nbytes(x):
    return x.size * jnp.dtype(x.dtype).itemsize


# ---------------------------------------------------------------------------
# Kernel bodies
# ---------------------------------------------------------------------------

def _sincos_lin1_swish(t_ref, w1_ref, b1_ref, neg_scale):
    """emb = [sin(t*freq), cos(t*freq)]; returns swish(emb @ W1 + b1) in f32."""
    mxu_dtype = w1_ref.dtype
    k_pad = w1_ref.shape[1]
    t = t_ref[...]                                                   # (B, 1) f32

    # Frequency table computed in-kernel: exp(-k * log(10000)/(half_dim-1)).
    # Rows k >= half_dim hit zero-padded W1 rows, so their contribution is 0.
    k = jax.lax.broadcasted_iota(jnp.int32, (1, k_pad), 1).astype(jnp.float32)
    freq = jnp.exp(k * neg_scale)                                    # (1, k_pad)
    ang = t * freq                                                   # (B, k_pad)
    s = jnp.sin(ang).astype(mxu_dtype)
    c = jnp.cos(ang).astype(mxu_dtype)

    # lin1 as two MXU pushes into one f32 accumulator (no lane-concat of
    # sin/cos); w1_ref[0] / w1_ref[1] are sublane-aligned views by construction.
    h = jnp.dot(s, w1_ref[0], preferred_element_type=jnp.float32)
    h = h + jnp.dot(c, w1_ref[1], preferred_element_type=jnp.float32)
    h = h + b1_ref[...]                                              # (B, n_pad) f32

    # Swish: x * sigmoid(x); sigmoid via exp + approx EUP reciprocal.
    return h * pl.reciprocal(1.0 + jnp.exp(-h), approx=True)


def _time_embedding_kernel(t_ref, w1_ref, b1_ref, w2_ref, b2_ref, o_ref, *, neg_scale):
    """Single-block kernel: everything resident in VMEM, grid=()."""
    mxu_dtype = w1_ref.dtype
    h = _sincos_lin1_swish(t_ref, w1_ref, b1_ref, neg_scale)         # (B, n_pad) f32
    out = jnp.dot(h.astype(mxu_dtype), w2_ref[...], preferred_element_type=jnp.float32)
    out = out + b2_ref[...]
    o_ref[...] = out.astype(o_ref.dtype)


def _time_embedding_tiled_kernel(t_ref, w1_ref, b1_ref, w2_ref, b2_ref, o_ref,
                                 h_ref, *, neg_scale):
    """W2 tiled over its output-N dim; hidden h computed once (first grid step)
    and kept resident in a VMEM scratch across the (sequential) grid."""
    @pl.when(pl.program_id(0) == 0)
    def _():
        h = _sincos_lin1_swish(t_ref, w1_ref, b1_ref, neg_scale)
        h_ref[...] = h.astype(h_ref.dtype)

    out = jnp.dot(h_ref[...], w2_ref[...], preferred_element_type=jnp.float32)
    out = out + b2_ref[...]                                          # (B, tn)
    o_ref[...] = out.astype(o_ref.dtype)


# ---------------------------------------------------------------------------
# Init-time parameter preparation (do this ONCE, not per forward call)
# ---------------------------------------------------------------------------

def prepare_time_embedding_params(w1, b1, w2, b2, *, weight_dtype=jnp.bfloat16):
    """One-time preprocessing of the TimeEmbedding parameters.

    w1: (n_channels // 4, n_channels), w2: (n_channels, n_channels) stored
    transposed vs PyTorch nn.Linear.weight (i.e. (in, out) so y = x @ W + b).
    Returns (params, meta): padded/cast device arrays + static metadata.
    """
    in1, n_channels = w1.shape
    assert in1 == n_channels // 4 and in1 % 2 == 0
    half_dim = in1 // 2
    assert half_dim >= 2, "half_dim must be >= 2 (matches the PyTorch module)"

    wbytes = jnp.dtype(weight_dtype).itemsize
    n_pad = _round_up(n_channels, 128)                   # lane-dense hidden/output
    k_pad = _round_up(half_dim, 8 * (4 // wbytes))       # sublane-aligned sin/cos split
    pad_c = n_pad - n_channels
    pad_k = k_pad - half_dim

    # Zero padding is exact: padded K rows of W1 are zero, padded hidden
    # columns are swish(0) = 0, padded output columns are 0 + 0.
    w1_sin = jnp.pad(w1[:half_dim], ((0, pad_k), (0, pad_c)))
    w1_cos = jnp.pad(w1[half_dim:], ((0, pad_k), (0, pad_c)))
    w1p = jnp.stack([w1_sin, w1_cos], axis=0).astype(weight_dtype)    # (2, k_pad, n_pad)
    w2p = jnp.pad(w2, ((0, pad_c), (0, pad_c))).astype(weight_dtype)  # (n_pad, n_pad)
    b1p = jnp.pad(b1, (0, pad_c)).reshape(1, n_pad).astype(jnp.float32)
    b2p = jnp.pad(b2, (0, pad_c)).reshape(1, n_pad).astype(jnp.float32)

    meta = dict(
        n_channels=n_channels, half_dim=half_dim, n_pad=n_pad, k_pad=k_pad,
        neg_scale=-math.log(10000.0) / (half_dim - 1),
    )
    return (w1p, b1p, w2p, b2p), meta


# ---------------------------------------------------------------------------
# Forward wrapper
# ---------------------------------------------------------------------------

def time_embedding(t, params, meta, *, slice_output=True,
                   vmem_budget_bytes=48 << 20, force_tiled=False, tile_n=None):
    """Forward pass.  t: (B,) f32 timesteps.

    Returns (B, n_channels) f32, or the lane-dense padded (B, n_pad) slab when
    slice_output=False (pad the consumer's first weight instead, saves a copy).
    """
    w1p, b1p, w2p, b2p = params
    n_channels, n_pad, k_pad = meta["n_channels"], meta["n_pad"], meta["k_pad"]
    neg_scale = meta["neg_scale"]
    B = t.shape[0]
    t2 = t.reshape(B, 1).astype(jnp.float32)

    wbytes = jnp.dtype(w1p.dtype).itemsize
    out_bytes = B * n_pad * 4
    small_bytes = _nbytes(t2) + _nbytes(w1p) + _nbytes(b1p) + _nbytes(b2p)

    cost = pl.CostEstimate(
        flops=2 * B * k_pad * n_pad * 2 + 2 * B * n_pad * n_pad,
        transcendentals=k_pad * (1 + 2 * B) + 2 * B * n_pad,
        bytes_accessed=small_bytes + _nbytes(w2p) + out_bytes,
    )

    # Conservative single-block VMEM footprint (operands + output, 2x headroom).
    est_single = 2 * (small_bytes + _nbytes(w2p) + out_bytes)

    if not force_tiled and est_single <= vmem_budget_bytes:
        # ---- single-block path (the common, latency-bound case) ----
        kernel = partial(_time_embedding_kernel, neg_scale=neg_scale)
        full = lambda a: pl.BlockSpec(a.shape, lambda: (0,) * a.ndim)
        out = pl.pallas_call(
            kernel,
            out_shape=jax.ShapeDtypeStruct((B, n_pad), jnp.float32),
            grid=(),
            in_specs=[full(t2), full(w1p), full(b1p), full(w2p), full(b2p)],
            out_specs=pl.BlockSpec((B, n_pad), lambda: (0, 0)),
            cost_estimate=cost,
            compiler_params=pltpu.CompilerParams(
                vmem_limit_bytes=int(vmem_budget_bytes)),
        )(t2, w1p, b1p, w2p, b2p)
    else:
        # ---- tiled fallback: tile W2 / b2 / output over the output-N dim ----
        def step_bytes(tn):
            return (2 * (small_bytes + n_pad * tn * wbytes + B * tn * 4)
                    + B * n_pad * wbytes)

        if tile_n is None:
            tile_n = 128
            for d in range(n_pad // 128, 0, -1):
                cand = 128 * d
                if n_pad % cand == 0 and step_bytes(cand) <= vmem_budget_bytes:
                    tile_n = cand
                    break
        assert n_pad % tile_n == 0 and tile_n % 128 == 0

        tkernel = partial(_time_embedding_tiled_kernel, neg_scale=neg_scale)
        out = pl.pallas_call(
            tkernel,
            out_shape=jax.ShapeDtypeStruct((B, n_pad), jnp.float32),
            grid=(n_pad // tile_n,),
            in_specs=[
                pl.BlockSpec((B, 1), lambda j: (0, 0)),
                pl.BlockSpec(w1p.shape, lambda j: (0, 0, 0)),
                pl.BlockSpec((1, n_pad), lambda j: (0, 0)),
                pl.BlockSpec((n_pad, tile_n), lambda j: (0, j)),
                pl.BlockSpec((1, tile_n), lambda j: (0, j)),
            ],
            out_specs=pl.BlockSpec((B, tile_n), lambda j: (0, j)),
            scratch_shapes=[pltpu.VMEM((B, n_pad), w1p.dtype)],
            cost_estimate=cost,
            compiler_params=pltpu.CompilerParams(
                vmem_limit_bytes=int(vmem_budget_bytes),
                # h scratch is filled on step 0 and reused -> keep on one core.
                dimension_semantics=("arbitrary",),
            ),
        )(t2, w1p, b1p, w2p, b2p)

    if slice_output and n_channels != n_pad:
        out = out[:, :n_channels]
    return out


# ---------------------------------------------------------------------------
# Pure-JAX reference (mirrors the PyTorch forward)
# ---------------------------------------------------------------------------

def reference(t, w1, b1, w2, b2, n_channels):
    half_dim = n_channels // 8
    scale = math.log(10000.0) / (half_dim - 1)
    freq = jnp.exp(jnp.arange(half_dim, dtype=jnp.float32) * -scale)
    emb = t[:, None] * freq[None, :]
    emb = jnp.concatenate((jnp.sin(emb), jnp.cos(emb)), axis=1)
    h = emb @ w1 + b1
    h = h * jax.nn.sigmoid(h)
    return h @ w2 + b2


def _make_params(key, n_channels):
    k_t, k_w1, k_b1, k_w2, k_b2 = jax.random.split(key, 5)
    in1 = n_channels // 4
    lim1 = 1.0 / math.sqrt(in1)
    w1 = jax.random.uniform(k_w1, (in1, n_channels), jnp.float32, -lim1, lim1)
    b1 = jax.random.uniform(k_b1, (n_channels,), jnp.float32, -lim1, lim1)
    lim2 = 1.0 / math.sqrt(n_channels)
    w2 = jax.random.uniform(k_w2, (n_channels, n_channels), jnp.float32, -lim2, lim2)
    b2 = jax.random.uniform(k_b2, (n_channels,), jnp.float32, -lim2, lim2)
    t = jax.random.uniform(k_t, (8,), jnp.float32, 0.0, 1000.0)
    return t, w1, b1, w2, b2


if __name__ == "__main__":
    key = jax.random.PRNGKey(0)
    k0, k1 = jax.random.split(key)

    # --- main test: n_channels = 64, B = 8, single-block kernel -------------
    n_channels = 64
    t, w1, b1, w2, b2 = _make_params(k0, n_channels)
    ref = reference(t, w1, b1, w2, b2, n_channels)

    # bf16-weight path (the default on all generations: halves weight DMA,
    # f32 accumulation / f32 elementwise math).
    params_bf16, meta = prepare_time_embedding_params(w1, b1, w2, b2)
    out_bf16 = jax.block_until_ready(time_embedding(t, params_bf16, meta))
    assert out_bf16.shape == (t.shape[0], n_channels)
    assert jnp.allclose(out_bf16, ref, atol=5e-2, rtol=5e-2), "bf16 kernel mismatch"

    # f32-weight path (tight tolerance; only the approx EUP reciprocal differs).
    params_f32, meta_f32 = prepare_time_embedding_params(
        w1, b1, w2, b2, weight_dtype=jnp.float32)
    out_f32 = jax.block_until_ready(time_embedding(t, params_f32, meta_f32))
    assert out_f32.shape == (t.shape[0], n_channels)
    assert jnp.allclose(out_f32, ref, atol=1e-2, rtol=1e-2), "f32 kernel mismatch"

    # --- tiled fallback path (forced): n_channels = 256, 2 output-N tiles ---
    n_big = 256
    tb, w1b, b1b, w2b, b2b = _make_params(k1, n_big)
    ref_big = reference(tb, w1b, b1b, w2b, b2b, n_big)
    params_big, meta_big = prepare_time_embedding_params(
        w1b, b1b, w2b, b2b, weight_dtype=jnp.float32)
    out_tiled = jax.block_until_ready(
        time_embedding(tb, params_big, meta_big, force_tiled=True, tile_n=128))
    assert out_tiled.shape == (tb.shape[0], n_big)
    assert jnp.allclose(out_tiled, ref_big, atol=1e-2, rtol=1e-2), "tiled kernel mismatch"

    print("KERNEL_OK")
</pallas_src>

<mosaic_0001>
module attributes {stable_mosaic.version = 11 : i64} {
  func.func @_time_embedding_kernel(%arg0: memref<8x1xf32, #tpu.memory_space<vmem>>, %arg1: memref<2x16x128xbf16, #tpu.memory_space<vmem>>, %arg2: memref<1x128xf32, #tpu.memory_space<vmem>>, %arg3: memref<128x128xbf16, #tpu.memory_space<vmem>>, %arg4: memref<1x128xf32, #tpu.memory_space<vmem>>, %arg5: memref<8x128xf32, #tpu.memory_space<vmem>>) attributes {dimension_semantics = [], scalar_prefetch = 0 : i64, scratch_operands = 0 : i64, tpu.core_type = #tpu.core_type<tc>} {
    %c0 = arith.constant 0 : index
    %c0_0 = arith.constant 0 : index
    %0 = vector.load %arg0[%c0, %c0_0] : memref<8x1xf32, #tpu.memory_space<vmem>>, vector<8x1xf32>
    %1 = tpu.iota {dimensions = array<i32: 1>} : vector<1x16xi32>
    %2 = arith.sitofp %1 : vector<1x16xi32> to vector<1x16xf32>
    %cst = arith.constant -1.31576288 : f32
    %3 = vector.broadcast %cst : f32 to vector<1x16xf32>
    %4 = arith.mulf %2, %3 : vector<1x16xf32>
    %5 = math.exp %4 : vector<1x16xf32>
    %6 = vector.broadcast %0 : vector<8x1xf32> to vector<8x16xf32>
    %7 = vector.broadcast %5 : vector<1x16xf32> to vector<8x16xf32>
    %8 = arith.mulf %6, %7 : vector<8x16xf32>
    %9 = math.sin %8 : vector<8x16xf32>
    %10 = arith.truncf %9 : vector<8x16xf32> to vector<8x16xbf16>
    %11 = math.cos %8 : vector<8x16xf32>
    %12 = arith.truncf %11 : vector<8x16xf32> to vector<8x16xbf16>
    %c0_1 = arith.constant 0 : index
    %c0_2 = arith.constant 0 : index
    %c0_3 = arith.constant 0 : index
    %13 = vector.load %arg1[%c0_1, %c0_2, %c0_3] : memref<2x16x128xbf16, #tpu.memory_space<vmem>>, vector<1x16x128xbf16>
    %14 = vector.shape_cast %13 : vector<1x16x128xbf16> to vector<16x128xbf16>
    %cst_4 = arith.constant dense<0.000000e+00> : vector<8x128xf32>
    %15 = tpu.matmul %10, %14, %cst_4 {dimension_numbers = #tpu.dot_dimension_numbers<[1], [0], [0], [1], [0, 0, 1, 1], [], []>} : vector<8x16xbf16>, vector<16x128xbf16>, vector<8x128xf32> -> vector<8x128xf32>
    %c1 = arith.constant 1 : index
    %c0_5 = arith.constant 0 : index
    %c0_6 = arith.constant 0 : index
    %16 = vector.load %arg1[%c1, %c0_5, %c0_6] : memref<2x16x128xbf16, #tpu.memory_space<vmem>>, vector<1x16x128xbf16>
    %17 = vector.shape_cast %16 : vector<1x16x128xbf16> to vector<16x128xbf16>
    %cst_7 = arith.constant dense<0.000000e+00> : vector<8x128xf32>
    %18 = tpu.matmul %12, %17, %cst_7 {dimension_numbers = #tpu.dot_dimension_numbers<[1], [0], [0], [1], [0, 0, 1, 1], [], []>} : vector<8x16xbf16>, vector<16x128xbf16>, vector<8x128xf32> -> vector<8x128xf32>
    %19 = arith.addf %15, %18 : vector<8x128xf32>
    %c0_8 = arith.constant 0 : index
    %c0_9 = arith.constant 0 : index
    %20 = vector.load %arg2[%c0_8, %c0_9] : memref<1x128xf32, #tpu.memory_space<vmem>>, vector<1x128xf32>
    %21 = vector.broadcast %20 : vector<1x128xf32> to vector<8x128xf32>
    %22 = arith.addf %19, %21 : vector<8x128xf32>
    %cst_10 = arith.constant 0.000000e+00 : f32
    %23 = vector.broadcast %cst_10 : f32 to vector<8x128xf32>
    %24 = arith.subf %23, %22 : vector<8x128xf32>
    %25 = math.exp %24 : vector<8x128xf32>
    %cst_11 = arith.constant 1.000000e+00 : f32
    %26 = vector.broadcast %cst_11 : f32 to vector<8x128xf32>
    %27 = arith.addf %26, %25 : vector<8x128xf32>
    %28 = tpu.reciprocal %27 {approx = true} : vector<8x128xf32> -> vector<8x128xf32>
    %29 = arith.mulf %22, %28 : vector<8x128xf32>
    %30 = arith.truncf %29 : vector<8x128xf32> to vector<8x128xbf16>
    %c0_12 = arith.constant 0 : index
    %c0_13 = arith.constant 0 : index
    %31 = vector.load %arg3[%c0_12, %c0_13] : memref<128x128xbf16, #tpu.memory_space<vmem>>, vector<128x128xbf16>
    %cst_14 = arith.constant dense<0.000000e+00> : vector<8x128xf32>
    %32 = tpu.matmul %30, %31, %cst_14 {dimension_numbers = #tpu.dot_dimension_numbers<[1], [0], [0], [1], [0, 0, 1, 1], [], []>} : vector<8x128xbf16>, vector<128x128xbf16>, vector<8x128xf32> -> vector<8x128xf32>
    %c0_15 = arith.constant 0 : index
    %c0_16 = arith.constant 0 : index
    %33 = vector.load %arg4[%c0_15, %c0_16] : memref<1x128xf32, #tpu.memory_space<vmem>>, vector<1x128xf32>
    %34 = vector.broadcast %33 : vector<1x128xf32> to vector<8x128xf32>
    %35 = arith.addf %32, %34 : vector<8x128xf32>
    %c0_17 = arith.constant 0 : index
    %c0_18 = arith.constant 0 : index
    %36 = vector.load %arg5[%c0_17, %c0_18] : memref<8x128xf32, #tpu.memory_space<vmem>>, vector<8x128xf32>
    tpu.vector_store %arg5[%c0_17, %c0_18], %35 {strides = array<i32>} : memref<8x128xf32, #tpu.memory_space<vmem>>, vector<8x128xf32>,
    return
  }
}

</mosaic_0001>

<bundles_post_ra>
// kernel: tpu_custom_call.1
= control target key start
LH: loop header
LB: loop body
LE: loop exit
PB: predicated region body
PF: predicated region fallthrough
CT: control target
= control target key end

     0   :  { %10 = vsyncpa [#allocation3], 0  ;;  %s818_s0 = inlined_call_operand.vmem [shape: f32[8,1], index: 0, kind: input, shape index: {}]   ;;  %s819_s1 = inlined_call_operand.hbm [shape: bf16[2,16,128], index: 1, kind: input, shape index: {}]   ;;  %s820_s2 = inlined_call_operand.vmem [shape: f32[1,128], index: 2, kind: input, shape index: {}]   ;;  %s821_s3 = inlined_call_operand.hbm [shape: bf16[128,128], index: 3, kind: input, shape index: {}]   ;;  %s822_s4 = inlined_call_operand.vmem [shape: f32[1,128], index: 4, kind: input, shape index: {}]   ;;  %s823_s5 = inlined_call_operand.hbm [shape: f32[8,128], index: 5, kind: output, shape index: {}]  }
   0x1   :  { %11 = vsyncpa [#allocation6], 0 }
   0x2   :  { %12 = vsyncpa [#allocation4], 0  ;;  %s19_s20 = sshll.u32 %s819_s1, 4  ;;  %s697_s21 = smov [#allocation2]   ;;  %s20_s20 = int_to_ptr.hbm [resolvable:$true] %s19_s20 }
   0x3   :  { %s21_s22 = sshll.u32 %s697_s21, 4  ;;  %s34_s25 = sshll.u32 %s821_s3, 4  ;;  %s22_s22 = int_to_ptr.vmem [resolvable:$true] %s21_s22  ;;  %s35_s25 = int_to_ptr.hbm [resolvable:$true] %s34_s25 }
   0x4   :  { %s698_s26 = smov 64   ;;  %s699_s27 = smov 4  }
   0x5   :  { %27 = dma.hbm_to_vmem [thread:$0]  %s20_s20, 256, %s22_s22, [#allocation3], %s698_s26, %s698_s26, %s699_s27  }
   0x6   :  { %s700_s28 = smov [#allocation5]  }
   0x7   :  { %s36_s29 = sshll.u32 %s700_s28, 4  ;;  %s37_s29 = int_to_ptr.vmem [resolvable:$true] %s36_s29 }
   0x8   :  { %42 = dma.hbm_to_vmem [thread:$0]  %s35_s25, 1024, %s37_s29, [#allocation6], %s698_s26, %s698_s26, %s699_s27  }
   0x9   :  { %691 = dma.done.wait [#allocation3], 256  }
   0xa   :  { %692 = vsyncadd [#allocation3], 4294967040 }
   0xb   :  { %693 = dma.done.wait [#allocation6], 1024  }
   0xc   :  { %694 = vsyncadd [#allocation6], 4294966272  ;;  %v701_v0 = vmov 0   ;;  %v54_v1 = vld [vmem:[%s818_s0] sm:$0xff]  ;;  %v55_v2 = vlaneseq  ;;  %v589_v10 = vld [vmem:[#allocation2 + $0x8] sm:$0xff]  ;;  %s529_s11 = sshll.u32 %s823_s5, 4  ;;  %s530_s11 = int_to_ptr.hbm [resolvable:$true] %s529_s11 }
   0xd   :  { %610 = vset.pattern.permute.xlu0 %v701_v0  ;;  %v588_v11 = vld [vmem:[#allocation2] sm:$0xff]  ;;  %400 = vmatpush.bf16.msra.mxu0 %v589_v10  ;;  %v702_v23 = vmov 683565275   ;;  %v703_v25 = vmov 2475754826  }
   0xe   :  { %63 = vperm.xlu0 %610, %v54_v1   ;;  %v56_v3 = vand.u32 127, %v55_v2  ;;  %422 = vmatpush.bf16.msra.mxu1 %v588_v11  ;;  %v704_v28 = vmov 2131351028   ;;  %v705_v31 = vmov 2102212464  }
   0xf   :  { %v706_v34 = vmov 920167782   ;;  %v707_v37 = vmov 1326507024  }
  0x10   :  { %v57_v4 = vcvt.s32.f32 %v56_v3 }
  0x12   :  { %v58_v5 = vmul.f32 -1.3157629, %v57_v4 }
  0x14   :  { %v59_v6 = vmul.f32 1.442695, %v58_v5 }
  0x16   :  { %613 = vpow2.f32 %v59_v6 }
  0x1c   :  { %v614_v7 = vpop.eup %613 }
  0x80   :  { %v64_v8 = vpop.permute.xlu0 %63 }
  0x81   :  { %v749_v9 = vmul.f32 %v614_v7, %v64_v8 }
  0x83   :  { %v70_v12 = vand.u32 2139095040, %v749_v9  ;;  %v67_v15 = vand.u32 2147483647, %v749_v9  ;;  %vm69_vm12 = vcmp.lt.s32.totalorder %v749_v9, 0 }
  0x85   :  { %v71_v13 = vshrl.u32 %v70_v12, 23  ;;  %v74_v17 = vand.u32 8388607, %v67_v15  ;;  %vm68_vm13 = vcmp.le.f32.partialorder %v67_v15, 0.7853982 }
  0x87   :  { %v540_v14 = vadd.s32 4294967169, %v71_v13  ;;  %v75_v21 = vor.u32 8388608, %v74_v17 }
  0x89   :  { %v77_v16 = vadd.s32 1, %v540_v14  ;;  %v766_v44 = vshll.u32 %v75_v21, 8 }
  0x8b   :  { %vm78_vm0 = vcmp.gt.s32.totalorder %v77_v16, 0  ;;  %v116_v53 = vand.u32 65535, %v766_v44  ;;  %v117_v54 = vshrl.u32 %v766_v44, 16 }
  0x8c   :  { %v79_v18 = vsel %vm78_vm0, %v77_v16, 0 }
  0x8d   :  { %v81_v19 = vand.u32 31, %v79_v18  ;;  %v757_v22 = vshrl.u32 %v79_v18, 5 }
  0x8f   :  { %v755_v20 = vsub.s32 32, %v81_v19  ;;  %v84_v24 = vshll.u32 %v702_v23, %v81_v19  ;;  %v87_v26 = vshll.u32 %v703_v25, %v81_v19  ;;  %v90_v30 = vshll.u32 %v704_v28, %v81_v19 }
  0x90   :  { %v93_v33 = vshll.u32 %v705_v31, %v81_v19  ;;  %v96_v36 = vshll.u32 %v706_v34, %v81_v19  ;;  %vm99_vm1 = vcmp.lt.s32.totalorder %v757_v22, 1  ;;  %vm102_vm2 = vcmp.lt.s32.totalorder %v757_v22, 4 }
  0x91   :  { %v85_v27 = vshrl.u32 %v703_v25, %v755_v20  ;;  %v88_v29 = vshrl.u32 %v704_v28, %v755_v20  ;;  %v91_v32 = vshrl.u32 %v705_v31, %v755_v20  ;;  %v94_v35 = vshrl.u32 %v706_v34, %v755_v20 }
  0x92   :  { %v97_v38 = vshrl.u32 %v707_v37, %v755_v20  ;;  %vm101_vm3 = vcmp.lt.s32.totalorder %v757_v22, 3  ;;  %vm100_vm4 = vcmp.lt.s32.totalorder %v757_v22, 2  ;;  %v83_v18 = vshrl.u32 %v702_v23, %v755_v20 }
  0x93   :  { %v86_v39 = vor.u32 %v85_v27, %v84_v24  ;;  %v89_v40 = vor.u32 %v88_v29, %v87_v26  ;;  %v92_v41 = vor.u32 %v91_v32, %v90_v30  ;;  %v95_v42 = vor.u32 %v94_v35, %v93_v33 }
  0x94   :  { %v98_v43 = vor.u32 %v97_v38, %v96_v36 }
  0x95   :  { %v107_v45 = vsel %vm99_vm1, %v86_v39, %v89_v40  ;;  %v111_v46 = vsel %vm99_vm1, %v89_v40, %v92_v41  ;;  %v108_v47 = vsel %vm102_vm2, %v95_v42, 920167782  ;;  %v104_v14 = vsel %vm102_vm2, %v92_v41, 2102212464 }
  0x96   :  { %v112_v48 = vsel %vm102_vm2, %v98_v43, 1326507024  ;;  %v109_v49 = vsel %vm101_vm3, %v92_v41, %v108_v47  ;;  %v103_v27 = vsel %vm99_vm1, %v83_v18, %v86_v39  ;;  %v105_v28 = vsel %vm101_vm3, %v89_v40, %v104_v14 }
  0x97   :  { %v113_v50 = vsel %vm101_vm3, %v95_v42, %v112_v48  ;;  %v110_v51 = vsel %vm100_vm4, %v107_v45, %v109_v49  ;;  %v106_v20 = vsel %vm100_vm4, %v103_v27, %v105_v28 }
  0x98   :  { %v114_v52 = vsel %vm100_vm4, %v111_v46, %v113_v50  ;;  %v140_v57 = vand.u32 65535, %v110_v51  ;;  %v141_v58 = vshrl.u32 %v110_v51, 16  ;;  %v160_v35 = vmul.u32 %v766_v44, %v106_v20  ;;  %v596_v20 = vld [vmem:[#allocation5 + $0x30] sm:$0xff] }
  0x99   :  { %v118_v55 = vand.u32 65535, %v114_v52  ;;  %v119_v56 = vshrl.u32 %v114_v52, 16  ;;  %vm210_vm4 = vweird.f32 %v749_v9 }
  0x9a   :  { %v143_v61 = vmul.u32 %v141_v58, %v116_v53  ;;  %v144_v62 = vmul.u32 %v140_v57, %v117_v54  ;;  %v142_v3 = vmul.u32 %v140_v57, %v116_v53  ;;  %v145_v7 = vmul.u32 %v141_v58, %v117_v54 }
  0x9b   :  { %v121_v59 = vmul.u32 %v119_v56, %v116_v53  ;;  %v122_v60 = vmul.u32 %v118_v55, %v117_v54  ;;  %v120_v63 = vmul.u32 %v118_v55, %v116_v53  ;;  %v123_v2 = vmul.u32 %v119_v56, %v117_v54  ;;  %v597_v55 = vld [vmem:[#allocation5 + $0x38] sm:$0xff] }
  0x9c   :  { %v146_v4 = vshll.u32 %v143_v61, 16  ;;  %v148_v10 = vshll.u32 %v144_v62, 16  ;;  %v147_v25 = vshrl.u32 %v143_v61, 16  ;;  %v149_v31 = vshrl.u32 %v144_v62, 16  ;;  %508 = vmatpush.bf16.msra.mxu2 %v597_v55 }
  0x9d   :  { %v124_v1 = vshll.u32 %v121_v59, 16  ;;  %v126_v5 = vshll.u32 %v122_v60, 16  ;;  %v125_v19 = vshrl.u32 %v121_v59, 16  ;;  %v127_v29 = vshrl.u32 %v122_v60, 16 }
  0x9e   :  { %vm150_vm6 = vc.u32 %v142_v3, %v146_v4  ;;  %v152_v11 = vadd.s32 %v146_v4, %v142_v3 }
  0x9f   :  { %vm128_vm5 = vc.u32 %v120_v63, %v124_v1  ;;  %v130_v6 = vadd.s32 %v124_v1, %v120_v63  ;;  %v151_v13 = vsel %vm150_vm6, 1, %v701_v0 }
  0xa0   :  { %v129_v8 = vsel %vm128_vm5, 1, %v701_v0  ;;  %v153_v17 = vadd.s32 %v151_v13, %v145_v7  ;;  %vm154_vm8 = vc.u32 %v152_v11, %v148_v10  ;;  %v156_v34 = vadd.s32 %v152_v11, %v148_v10  ;;  %509 = vmatpush.bf16.msra.mxu2 %v596_v20 }
  0xa1   :  { %v131_v12 = vadd.s32 %v129_v8, %v123_v2  ;;  %vm132_vm7 = vc.u32 %v130_v6, %v126_v5  ;;  %v155_v24 = vsel %vm154_vm8, 1, %v701_v0  ;;  %vm389_vm5 = vcmask 130048  }
  0xa2   :  { %v133_v16 = vsel %vm132_vm7, 1, %v701_v0  ;;  %v157_v26 = vadd.s32 %v155_v24, %v153_v17 }
  0xa3   :  { %v135_v21 = vadd.s32 %v133_v16, %v131_v12 }
  0xa4   :  { %v158_v32 = vadd.s32 %v157_v26, %v147_v25 }
  0xa5   :  { %v136_v30 = vadd.s32 %v135_v21, %v125_v19 }
  0xa6   :  { %v159_v23 = vadd.s32 %v158_v32, %v149_v31 }
  0xa7   :  { %v137_v33 = vadd.s32 %v136_v30, %v127_v29 }
  0xa8   :  { %v163_v0 = vadd.s32 1, %v159_v23 }
  0xa9   :  { %vm162_vm9 = vc.u32 %v137_v33, %v156_v34  ;;  %v161_v22 = vadd.s32 %v156_v34, %v137_v33 }
  0xaa   :  { %v164_v36 = vsel %vm162_vm9, %v163_v0, %v159_v23  ;;  %v595_v23 = vld [vmem:[#allocation5 + $0x28] sm:$0xff]  ;;  %v594_v0 = vld [vmem:[#allocation5 + $0x20] sm:$0xff] }
  0xab   :  { %v165_v37 = vadd.s32 %v164_v36, %v160_v35  ;;  %510 = vmatpush.bf16.msra.mxu2 %v595_v23  ;;  %v593_v35 = vld [vmem:[#allocation5 + $0x18] sm:$0xff]  ;;  %v592_v36 = vld [vmem:[#allocation5 + $0x10] sm:$0xff] }
  0xad   :  { %v166_v38 = vadd.s32 536870912, %v165_v37 }
  0xaf   :  { %v167_v39 = vshrl.u32 %v166_v38, 30  ;;  %511 = vmatpush.bf16.msra.mxu2 %v594_v0  ;;  %v611_v38 = vld [vmem:[%s820_s2] ss:$0 sm:$0xff]  ;;  %s708_s2 = smov [#allocation7]  }
  0xb0   :  { %s527_s8 = sshll.u32 %s708_s2, 4  ;;  %s528_s8 = int_to_ptr.vmem [resolvable:$true] %s527_s8 }
  0xb1   :  { %v168_v41 = vshll.u32 %v167_v39, 30  ;;  %v191_v61 = vsub.s32 4, %v167_v39 }
  0xb3   :  { %v169_v40 = vsub.s32 %v165_v37, %v168_v41  ;;  %v192_v3 = vsel %vm69_vm12, %v191_v61, %v167_v39  ;;  %512 = vmatpush.bf16.msra.mxu2 %v593_v35  ;;  %v590_v37 = vld [vmem:[#allocation5] sm:$0xff] }
  0xb4   :  { %v194_v6 = vsel %vm68_vm13, 0, %v192_v3 }
  0xb5   :  { %vm170_vm10 = vcmp.lt.s32.totalorder %v169_v40, 0  ;;  %v171_v42 = vsub.s32 0, %v169_v40  ;;  %v211_v12 = vadd.s32 3, %v194_v6  ;;  %v367_v17 = vand.u32 3, %v194_v6 }
  0xb7   :  { %v172_v43 = vsel %vm170_vm10, %v171_v42, %v169_v40  ;;  %v212_v18 = vand.u32 3, %v211_v12  ;;  %vm368_vm14 = vcmp.lt.s32.totalorder %v367_v17, 2  ;;  %vm369_vm15 = vcmp.eq.s32.totalorder %v367_v17, 0  ;;  %513 = vmatpush.bf16.msra.mxu2 %v592_v36 }
  0xb8   :  { %v173_v45 = vclz %v172_v43  ;;  %vm372_vm0 = vcmp.eq.s32.totalorder %v367_v17, 2 }
  0xb9   :  { %vm213_vm1 = vcmp.lt.s32.totalorder %v212_v18, 2  ;;  %vm214_vm2 = vcmp.eq.s32.totalorder %v212_v18, 0  ;;  %vm217_vm3 = vcmp.eq.s32.totalorder %v212_v18, 2 }
  0xba   :  { %v541_v46 = vadd.s32 4294967294, %v173_v45 }
  0xbc   :  { %vm542_vm11 = vcmp.lt.s32.totalorder %v541_v46, 0 }
  0xbd   :  { %v176_v47 = vsel %vm542_vm11, 0, %v541_v46 }
  0xbe   :  { %v177_v48 = vsub.s32 32, %v176_v47  ;;  %v181_v49 = vsub.s32 4294967266, %v176_v47  ;;  %v178_v50 = vshll.u32 %v169_v40, %v176_v47 }
  0xc0   :  { %v179_v51 = vshrl.u32 %v161_v22, %v177_v48  ;;  %v182_v52 = vadd.s32 127, %v181_v49 }
  0xc2   :  { %v180_v44 = vor.u32 %v179_v51, %v178_v50  ;;  %v183_v53 = vshll.u32 %v182_v52, 23  ;;  %v612_v52 = vld [vmem:[%s822_s4] ss:$0 sm:$0xff] }
  0xc4   :  { %v184_v54 = vor.u32 4788187, %v183_v53  ;;  %v187_v57 = vcvt.s32.f32 %v180_v44 }
  0xc6   :  { %v185_v56 = vand.u32 2147483647, %v184_v54 }
  0xc8   :  { %v188_v58 = vmul.f32 %v187_v57, %v185_v56 }
  0xca   :  { %v189_v59 = vxor.u32 2147483648, %v188_v58 }
  0xcc   :  { %v190_v60 = vsel %vm69_vm12, %v189_v59, %v188_v58 }
  0xcd   :  { %v193_v62 = vsel %vm68_vm13, %v749_v9, %v190_v60  ;;  %v591_v9 = vld [vmem:[#allocation5 + $0x8] sm:$0xff] }
  0xce   :  { %v195_v63 = vmul.f32 %v193_v62, %v193_v62  ;;  %514 = vmatpush.bf16.msra.mxu2 %v591_v9 }
  0xd0   :  { %v196_v1 = vmul.f32 -0.001358992, %v195_v63  ;;  %v203_v2 = vmul.f32 -0.00019511016, %v195_v63 }
  0xd2   :  { %v197_v4 = vadd.f32 0.041655596, %v196_v1  ;;  %v204_v5 = vadd.f32 0.008332121, %v203_v2  ;;  %515 = vmatpush.bf16.msra.mxu2 %v590_v37 }
  0xd4   :  { %v198_v7 = vmul.f32 %v197_v4, %v195_v63  ;;  %v205_v8 = vmul.f32 %v204_v5, %v195_v63 }
  0xd6   :  { %v199_v10 = vadd.f32 -0.4999988, %v198_v7  ;;  %v206_v11 = vadd.f32 -0.16666654, %v205_v8 }
  0xd8   :  { %v200_v13 = vmul.f32 %v199_v10, %v195_v63  ;;  %v207_v14 = vmul.f32 %v206_v11, %v195_v63 }
  0xda   :  { %v201_v16 = vadd.f32 1.0, %v200_v13  ;;  %v208_v15 = vadd.f32 1.0, %v207_v14 }
  0xdc   :  { %v209_v19 = vmul.f32 %v208_v15, %v193_v62  ;;  %v218_v21 = vxor.u32 2147483648, %v201_v16 }
  0xde   :  { %v215_v24 = vxor.u32 2147483648, %v209_v19  ;;  %v374_v26 = vsel %vm372_vm0, %v218_v21, %v209_v19  ;;  %v219_v28 = vsel %vm217_vm3, %v218_v21, %v209_v19 }
  0xe0   :  { %v371_v25 = vsel %vm369_vm15, %v201_v16, %v215_v24  ;;  %v216_v27 = vsel %vm214_vm2, %v201_v16, %v215_v24 }
  0xe1   :  { %v375_v29 = vsel %vm368_vm14, %v371_v25, %v374_v26  ;;  %v220_v30 = vsel %vm213_vm1, %v216_v27, %v219_v28 }
  0xe2   :  { %v376_v31 = vsel %vm210_vm4, nan, %v375_v29  ;;  %v221_v32 = vsel %vm210_vm4, nan, %v220_v30 }
  0xe3   :  { %v377_v33 = vpack.c.bf16 %v376_v31, %v376_v31  ;;  %v222_v34 = vpack.c.bf16 %v221_v32, %v221_v32 }
  0xe5   :  { %550 = vmatmul.msk.bf16.vlgmr.msra.gmra.mxu0 %vm389_vm5, %v377_v33  ;;  %555 = vmatmul.msk.bf16.vlgmr.msra.gmra.mxu1 %vm389_vm5, %v222_v34 }
 0x162   :  { %v402_v39 = vpop.f32.mrf.mxu0  ;;  %v424_v41 = vpop.f32.mrf.mxu1 }
 0x163   :  { %v425_v40 = vadd.f32 %v424_v41, %v402_v39 }
 0x165   :  { %v432_v42 = vadd.f32 %v611_v38, %v425_v40 }
 0x167   :  { %v433_v43 = vsub.f32 0.0, %v432_v42 }
 0x169   :  { %v434_v45 = vmul.f32 1.442695, %v433_v43 }
 0x16a   :  { %v404_v46 = vpop.f32.mrf.mxu0  ;;  %v426_v47 = vpop.f32.mrf.mxu1 }
 0x16b   :  { %615 = vpow2.f32 %v434_v45 }
 0x171   :  { %v616_v22 = vpop.eup %615 }
 0x172   :  { %v436_v48 = vadd.f32 1.0, %v616_v22 }
 0x174   :  { %617 = vrcp.f32 %v436_v48 }
 0x17a   :  { %v618_v49 = vpop.eup %617 }
 0x17b   :  { %v438_v50 = vmul.f32 %v618_v49, %v432_v42 }
 0x17d   :  { %v439_v51 = vpack.c.bf16 %v438_v50, %v438_v50 }
 0x17f   :  { %516 = vmatmul.bf16.vlgmr.msra.gmra.mxu2 %v439_v51 }
 0x202   :  { %v517_v44 = vpop.f32.mrf.mxu2 }
 0x203   :  { %v518_v53 = vadd.f32 %v612_v52, %v517_v44 }
 0x205   :  { %521 = vst [vmem:[#allocation7] sm:$0xff] %v518_v53 }
 0x206   :  { %532 = dma.vmem_to_hbm [thread:$0]  %s528_s8, 128, %s530_s11, [#allocation4]  }
 0x20a   :  { %v519_v54 = vpop.f32.mrf.mxu2 }
 0x20b   :  { %695 = dma.done.wait [#allocation4], 128  }
 0x20c   :  { %696 = vsyncadd [#allocation4], 4294967168 }
 0x20d   :  { %537 = vsyncpa [#allocation3], 1 }
 0x20e   :  { %538 = vsyncpa [#allocation6], 1 }
 0x20f   :  { %539 = vsyncpa [#allocation4], 1 }

</bundles_post_ra>
